<compile_context>
chip_gen: v5e
topology: v5e:2x2
jax: 0.10.0
libtpu: 0.0.40
codegen_flags: <defaults>
</compile_context>

<pallas_src>
import math
import functools

import jax
import jax.numpy as jnp
from jax import lax
from jax.experimental import pallas as pl
from jax.experimental.pallas import tpu as pltpu


NEG_INF = -1e30  # large finite negative: masked lanes underflow to 0, never NaN


def _bdot(lhs, rhs, c_lhs, c_rhs):
    """Head-batched dot_general (batch on axis 0) with f32 accumulation."""
    return lax.dot_general(
        lhs, rhs,
        dimension_numbers=(((c_lhs,), (c_rhs,)), ((0,), (0,))),
        preferred_element_type=jnp.float32)


def flash_att_kernel(x_q_ref, x_kv_ref,
                     w_q_ref, b_q_ref, w_k_ref, b_k_ref, w_v_ref, b_v_ref,
                     w_proj_ref, b_proj_ref,
                     o_ref,
                     q_s, m_s, l_s, acc_s,
                     *, n_head, kv_block):
    kvi = pl.program_id(1)
    tq = q_s.shape[1]          # query rows handled per batch (= T here)
    tkv = kv_block             # kv rows per grid step

    @pl.when(kvi == 0)
    def _init():
        # Q projection, all heads batched on the leading axis:
        #   q[h, t, d] = sum_c x[t, c] * w_q[h, c, d]
        # (1/sqrt(hs) is already folded into w_q / b_q on the host.)
        x_q = x_q_ref[0]                                        # (T, C) bf16
        xb = jnp.broadcast_to(x_q, (n_head,) + x_q.shape)       # (nh, T, C)
        q = _bdot(xb, w_q_ref[...], 2, 1) + b_q_ref[...]        # (nh, T, hs) f32
        q_s[...] = q.astype(q_s.dtype)
        m_s[...] = jnp.full_like(m_s, NEG_INF)
        l_s[...] = jnp.zeros_like(l_s)
        acc_s[...] = jnp.zeros_like(acc_s)

    # K / V projection for this KV tile, heads batched.
    x_kv = x_kv_ref[0]                                          # (tkv, C) bf16
    xkb = jnp.broadcast_to(x_kv, (n_head,) + x_kv.shape)        # (nh, tkv, C)
    k = _bdot(xkb, w_k_ref[...], 2, 1) + b_k_ref[...]           # (nh, tkv, hs) f32
    v = _bdot(xkb, w_v_ref[...], 2, 1) + b_v_ref[...]           # (nh, tkv, hs) f32
    k16 = k.astype(jnp.bfloat16)
    v16 = v.astype(jnp.bfloat16)

    # Scores: contract the head dim of Q and K directly (no transpose).
    s = _bdot(q_s[...], k16, 2, 2)                              # (nh, T, tkv) f32

    # Causal mask with the global column offset of this KV tile.
    row = lax.broadcasted_iota(jnp.int32, (n_head, tq, tkv), 1)
    col = lax.broadcasted_iota(jnp.int32, (n_head, tq, tkv), 2) + kvi * tkv
    s = jnp.where(row >= col, s, NEG_INF)

    # Online softmax update (f32 elementwise math).
    m_prev = m_s[...]
    m_new = jnp.maximum(m_prev, jnp.max(s, axis=-1, keepdims=True))
    alpha = jnp.exp(m_prev - m_new)
    p = jnp.exp(s - m_new)
    l_s[...] = alpha * l_s[...] + jnp.sum(p, axis=-1, keepdims=True)
    acc_s[...] = alpha * acc_s[...] + _bdot(p.astype(jnp.bfloat16), v16, 2, 1)
    m_s[...] = m_new

    @pl.when(kvi == pl.num_programs(1) - 1)
    def _finalize():
        y = acc_s[...] * pl.reciprocal(l_s[...], approx=True)   # (nh, T, hs) f32
        # Output projection: sum_h y[h] @ w_proj[h]  ->  (T, C); no head concat.
        parts = _bdot(y.astype(jnp.bfloat16), w_proj_ref[...], 2, 1)  # (nh, T, C)
        out = jnp.sum(parts, axis=0) + b_proj_ref[...]
        o_ref[0] = out.astype(o_ref.dtype)


def flash_att_forward(x, w_qkv, b_qkv, w_proj, b_proj, *, n_head, kv_block=None):
    """x: (B, T, C); w_qkv: (C, 3C) (in, out); b_qkv: (1, 3C);
    w_proj: (C, C) (in, out); b_proj: (1, C)."""
    B, T, C = x.shape
    assert C % n_head == 0
    hs = C // n_head
    if kv_block is None:
        kv_block = min(T, 128)
    assert T % kv_block == 0
    num_kv = T // kv_block
    scale = 1.0 / math.sqrt(hs)

    # --- restructure parameters outside the kernel (XLA side, free) ---------
    # Heads become a leading batch axis so the kernel never lane-slices 8-wide
    # head chunks, transposes, or concatenates along lanes.  The 1/sqrt(hs)
    # attention scale is folded into the Q weight/bias here (f32, pre-cast).
    def split_heads_w(w2d):                       # (C, C) -> (nh, C, hs)
        return w2d.reshape(C, n_head, hs).transpose(1, 0, 2)

    w_q = (split_heads_w(w_qkv[:, :C]) * scale).astype(jnp.bfloat16)
    w_k = split_heads_w(w_qkv[:, C:2 * C]).astype(jnp.bfloat16)
    w_v = split_heads_w(w_qkv[:, 2 * C:]).astype(jnp.bfloat16)

    b_flat = b_qkv.reshape(3 * C).astype(jnp.float32)
    b_q = b_flat[:C].reshape(n_head, 1, hs) * scale
    b_k = b_flat[C:2 * C].reshape(n_head, 1, hs)
    b_v = b_flat[2 * C:].reshape(n_head, 1, hs)

    w_proj_r = w_proj.reshape(n_head, hs, C).astype(jnp.bfloat16)   # (nh, hs, C)
    b_proj_r = b_proj.reshape(1, C).astype(jnp.float32)

    x16 = x.astype(jnp.bfloat16)

    kernel = functools.partial(
        flash_att_kernel, n_head=n_head, kv_block=kv_block)

    def full(shape):
        return pl.BlockSpec(shape, lambda b, j: (0,) * len(shape))

    # TODO(synk): for long sequences also tile the query axis (second parallel
    # grid dim -> feeds both v7x TensorCores) and pad C to a multiple of 128
    # for unmasked output stores; unnecessary at these toy shapes.
    return pl.pallas_call(
        kernel,
        out_shape=jax.ShapeDtypeStruct((B, T, C), x.dtype),
        grid=(B, num_kv),
        in_specs=[
            pl.BlockSpec((1, T, C), lambda b, j: (b, 0, 0)),         # x for Q rows
            pl.BlockSpec((1, kv_block, C), lambda b, j: (b, j, 0)),  # x for K/V tile
            full((n_head, C, hs)),   # w_q (scale folded in)
            full((n_head, 1, hs)),   # b_q (scale folded in)
            full((n_head, C, hs)),   # w_k
            full((n_head, 1, hs)),   # b_k
            full((n_head, C, hs)),   # w_v
            full((n_head, 1, hs)),   # b_v
            full((n_head, hs, C)),   # w_proj (head-batched)
            full((1, C)),            # b_proj
        ],
        out_specs=pl.BlockSpec((1, T, C), lambda b, j: (b, 0, 0)),
        scratch_shapes=[
            pltpu.VMEM((n_head, T, hs), jnp.bfloat16),   # Q (scale pre-folded)
            pltpu.VMEM((n_head, T, 1), jnp.float32),     # running max m
            pltpu.VMEM((n_head, T, 1), jnp.float32),     # running denom l
            pltpu.VMEM((n_head, T, hs), jnp.float32),    # output accumulator
        ],
        compiler_params=pltpu.CompilerParams(
            dimension_semantics=("parallel", "arbitrary")),
    )(x16, x16, w_q, b_q, w_k, b_k, w_v, b_v, w_proj_r, b_proj_r)


def flash_att_reference(x, w_qkv, b_qkv, w_proj, b_proj, *, n_head):
    """Pure-JAX f32 reference matching the PyTorch forward (eval mode)."""
    B, T, C = x.shape
    hs = C // n_head
    qkv = x @ w_qkv + b_qkv[0]
    q, k, v = jnp.split(qkv, 3, axis=-1)
    q = q.reshape(B, T, n_head, hs).transpose(0, 2, 1, 3)
    k = k.reshape(B, T, n_head, hs).transpose(0, 2, 1, 3)
    v = v.reshape(B, T, n_head, hs).transpose(0, 2, 1, 3)
    s = jnp.einsum('bhtd,bhsd->bhts', q, k) / math.sqrt(hs)
    mask = jnp.tril(jnp.ones((T, T), dtype=bool))
    s = jnp.where(mask, s, -jnp.inf)
    p = jax.nn.softmax(s, axis=-1)
    y = jnp.einsum('bhts,bhsd->bhtd', p, v)
    y = y.transpose(0, 2, 1, 3).reshape(B, T, C)
    return y @ w_proj + b_proj[0]


if __name__ == "__main__":
    # Config analogous to args: n_embed=32, n_head=4, bias=True, dropout=0.
    B, T, C = 2, 8, 32
    n_head = 4

    key = jax.random.PRNGKey(0)
    kx, kwq, kbq, kwp, kbp = jax.random.split(key, 5)

    x = jax.random.normal(kx, (B, T, C), dtype=jnp.float32)

    # PyTorch-Linear-style uniform init, pre-transposed to (in, out).
    bound = 1.0 / math.sqrt(C)
    w_qkv = jax.random.uniform(kwq, (C, 3 * C), minval=-bound, maxval=bound,
                               dtype=jnp.float32)
    b_qkv = jax.random.uniform(kbq, (1, 3 * C), minval=-bound, maxval=bound,
                               dtype=jnp.float32)
    w_proj = jax.random.uniform(kwp, (C, C), minval=-bound, maxval=bound,
                                dtype=jnp.float32)
    b_proj = jax.random.uniform(kbp, (1, C), minval=-bound, maxval=bound,
                                dtype=jnp.float32)

    out = flash_att_forward(x, w_qkv, b_qkv, w_proj, b_proj, n_head=n_head)
    out = jax.block_until_ready(out)

    ref = flash_att_reference(x, w_qkv, b_qkv, w_proj, b_proj, n_head=n_head)
    assert out.shape == (B, T, C)
    # bf16 matmul operands -> loosened tolerance vs the f32 reference.
    assert jnp.allclose(out, ref, atol=5e-2, rtol=5e-2), (
        "mismatch vs reference: max abs err = "
        f"{float(jnp.max(jnp.abs(out - ref)))}")

    print("KERNEL_OK")
</pallas_src>

<mosaic_0001>
module attributes {stable_mosaic.version = 11 : i64} {
  func.func @flash_att_kernel(%arg0: i32, %arg1: i32, %arg2: memref<1x8x32xbf16, #tpu.memory_space<vmem>>, %arg3: memref<1x8x32xbf16, #tpu.memory_space<vmem>>, %arg4: memref<4x32x8xbf16, #tpu.memory_space<vmem>>, %arg5: memref<4x1x8xf32, #tpu.memory_space<vmem>>, %arg6: memref<4x32x8xbf16, #tpu.memory_space<vmem>>, %arg7: memref<4x1x8xf32, #tpu.memory_space<vmem>>, %arg8: memref<4x32x8xbf16, #tpu.memory_space<vmem>>, %arg9: memref<4x1x8xf32, #tpu.memory_space<vmem>>, %arg10: memref<4x8x32xbf16, #tpu.memory_space<vmem>>, %arg11: memref<1x32xf32, #tpu.memory_space<vmem>>, %arg12: memref<1x8x32xf32, #tpu.memory_space<vmem>>, %arg13: memref<4x8x8xbf16, #tpu.memory_space<vmem>>, %arg14: memref<4x8x1xf32, #tpu.memory_space<vmem>>, %arg15: memref<4x8x1xf32, #tpu.memory_space<vmem>>, %arg16: memref<4x8x8xf32, #tpu.memory_space<vmem>>) attributes {dimension_semantics = [#tpu.dimension_semantics<parallel>, #tpu.dimension_semantics<arbitrary>], iteration_bounds = array<i64: 2, 1>, scalar_prefetch = 0 : i64, scratch_operands = 4 : i64, tpu.core_type = #tpu.core_type<tc>, window_params = [{transform_indices = @transform_0, window_bounds = array<i64: 1, 8, 32>}, {transform_indices = @transform_1, window_bounds = array<i64: 1, 8, 32>}, {pipeline_mode = #tpu.pipeline_mode<synchronous>, transform_indices = @transform_2, window_bounds = array<i64: 4, 32, 8>}, {pipeline_mode = #tpu.pipeline_mode<synchronous>, transform_indices = @transform_3, window_bounds = array<i64: 4, 1, 8>}, {pipeline_mode = #tpu.pipeline_mode<synchronous>, transform_indices = @transform_4, window_bounds = array<i64: 4, 32, 8>}, {pipeline_mode = #tpu.pipeline_mode<synchronous>, transform_indices = @transform_5, window_bounds = array<i64: 4, 1, 8>}, {pipeline_mode = #tpu.pipeline_mode<synchronous>, transform_indices = @transform_6, window_bounds = array<i64: 4, 32, 8>}, {pipeline_mode = #tpu.pipeline_mode<synchronous>, transform_indices = @transform_7, window_bounds = array<i64: 4, 1, 8>}, {pipeline_mode = #tpu.pipeline_mode<synchronous>, transform_indices = @transform_8, window_bounds = array<i64: 4, 8, 32>}, {pipeline_mode = #tpu.pipeline_mode<synchronous>, transform_indices = @transform_9, window_bounds = array<i64: 1, 32>}, {transform_indices = @transform_10, window_bounds = array<i64: 1, 8, 32>}]} {
    %c0_i32 = arith.constant 0 : i32
    %0 = arith.cmpi eq, %arg1, %c0_i32 : i32
    %1 = arith.extui %0 : i1 to i32
    %c0_i32_0 = arith.constant 0 : i32
    %2 = arith.cmpi ne, %1, %c0_i32_0 : i32
    scf.if %2 {
      %c0_44 = arith.constant 0 : index
      %c0_45 = arith.constant 0 : index
      %c0_46 = arith.constant 0 : index
      %55 = vector.load %arg2[%c0_44, %c0_45, %c0_46] : memref<1x8x32xbf16, #tpu.memory_space<vmem>>, vector<1x8x32xbf16>
      %56 = vector.shape_cast %55 : vector<1x8x32xbf16> to vector<8x32xbf16>
      %57 = vector.shape_cast %56 : vector<8x32xbf16> to vector<1x8x32xbf16>
      %58 = vector.broadcast %57 : vector<1x8x32xbf16> to vector<4x8x32xbf16>
      %c0_47 = arith.constant 0 : index
      %c0_48 = arith.constant 0 : index
      %c0_49 = arith.constant 0 : index
      %59 = vector.load %arg4[%c0_47, %c0_48, %c0_49] : memref<4x32x8xbf16, #tpu.memory_space<vmem>>, vector<4x32x8xbf16>
      %cst_50 = arith.constant dense<0.000000e+00> : vector<4x8x8xf32>
      %60 = tpu.matmul %58, %59, %cst_50 {dimension_numbers = #tpu.dot_dimension_numbers<[2], [1], [1], [2], [0, 0, 0, 1, 1, 2], [0], [0]>} : vector<4x8x32xbf16>, vector<4x32x8xbf16>, vector<4x8x8xf32> -> vector<4x8x8xf32>
      %c0_51 = arith.constant 0 : index
      %c0_52 = arith.constant 0 : index
      %c0_53 = arith.constant 0 : index
      %61 = vector.load %arg5[%c0_51, %c0_52, %c0_53] : memref<4x1x8xf32, #tpu.memory_space<vmem>>, vector<4x1x8xf32>
      %62 = vector.broadcast %61 : vector<4x1x8xf32> to vector<4x8x8xf32>
      %63 = arith.addf %60, %62 : vector<4x8x8xf32>
      %64 = arith.truncf %63 : vector<4x8x8xf32> to vector<4x8x8xbf16>
      %c0_54 = arith.constant 0 : index
      %c0_55 = arith.constant 0 : index
      %c0_56 = arith.constant 0 : index
      %65 = vector.load %arg13[%c0_54, %c0_55, %c0_56] : memref<4x8x8xbf16, #tpu.memory_space<vmem>>, vector<4x8x8xbf16>
      tpu.vector_store %arg13[%c0_54, %c0_55, %c0_56], %64 {strides = array<i32>} : memref<4x8x8xbf16, #tpu.memory_space<vmem>>, vector<4x8x8xbf16>,
      %cst_57 = arith.constant -1.000000e+30 : f32
      %66 = vector.broadcast %cst_57 : f32 to vector<4x8x1xf32>
      %c0_58 = arith.constant 0 : index
      %c0_59 = arith.constant 0 : index
      %c0_60 = arith.constant 0 : index
      %67 = vector.load %arg14[%c0_58, %c0_59, %c0_60] : memref<4x8x1xf32, #tpu.memory_space<vmem>>, vector<4x8x1xf32>
      tpu.vector_store %arg14[%c0_58, %c0_59, %c0_60], %66 {strides = array<i32>} : memref<4x8x1xf32, #tpu.memory_space<vmem>>, vector<4x8x1xf32>,
      %cst_61 = arith.constant 0.000000e+00 : f32
      %68 = vector.broadcast %cst_61 : f32 to vector<4x8x1xf32>
      %c0_62 = arith.constant 0 : index
      %c0_63 = arith.constant 0 : index
      %c0_64 = arith.constant 0 : index
      %69 = vector.load %arg15[%c0_62, %c0_63, %c0_64] : memref<4x8x1xf32, #tpu.memory_space<vmem>>, vector<4x8x1xf32>
      tpu.vector_store %arg15[%c0_62, %c0_63, %c0_64], %68 {strides = array<i32>} : memref<4x8x1xf32, #tpu.memory_space<vmem>>, vector<4x8x1xf32>,
      %cst_65 = arith.constant 0.000000e+00 : f32
      %70 = vector.broadcast %cst_65 : f32 to vector<4x8x8xf32>
      %c0_66 = arith.constant 0 : index
      %c0_67 = arith.constant 0 : index
      %c0_68 = arith.constant 0 : index
      %71 = vector.load %arg16[%c0_66, %c0_67, %c0_68] : memref<4x8x8xf32, #tpu.memory_space<vmem>>, vector<4x8x8xf32>
      tpu.vector_store %arg16[%c0_66, %c0_67, %c0_68], %70 {strides = array<i32>} : memref<4x8x8xf32, #tpu.memory_space<vmem>>, vector<4x8x8xf32>,
    } else {
    }
    %c0 = arith.constant 0 : index
    %c0_1 = arith.constant 0 : index
    %c0_2 = arith.constant 0 : index
    %3 = vector.load %arg3[%c0, %c0_1, %c0_2] : memref<1x8x32xbf16, #tpu.memory_space<vmem>>, vector<1x8x32xbf16>
    %4 = vector.shape_cast %3 : vector<1x8x32xbf16> to vector<8x32xbf16>
    %5 = vector.shape_cast %4 : vector<8x32xbf16> to vector<1x8x32xbf16>
    %6 = vector.broadcast %5 : vector<1x8x32xbf16> to vector<4x8x32xbf16>
    %c0_3 = arith.constant 0 : index
    %c0_4 = arith.constant 0 : index
    %c0_5 = arith.constant 0 : index
    %7 = vector.load %arg6[%c0_3, %c0_4, %c0_5] : memref<4x32x8xbf16, #tpu.memory_space<vmem>>, vector<4x32x8xbf16>
    %cst = arith.constant dense<0.000000e+00> : vector<4x8x8xf32>
    %8 = tpu.matmul %6, %7, %cst {dimension_numbers = #tpu.dot_dimension_numbers<[2], [1], [1], [2], [0, 0, 0, 1, 1, 2], [0], [0]>} : vector<4x8x32xbf16>, vector<4x32x8xbf16>, vector<4x8x8xf32> -> vector<4x8x8xf32>
    %c0_6 = arith.constant 0 : index
    %c0_7 = arith.constant 0 : index
    %c0_8 = arith.constant 0 : index
    %9 = vector.load %arg7[%c0_6, %c0_7, %c0_8] : memref<4x1x8xf32, #tpu.memory_space<vmem>>, vector<4x1x8xf32>
    %10 = vector.broadcast %9 : vector<4x1x8xf32> to vector<4x8x8xf32>
    %11 = arith.addf %8, %10 : vector<4x8x8xf32>
    %c0_9 = arith.constant 0 : index
    %c0_10 = arith.constant 0 : index
    %c0_11 = arith.constant 0 : index
    %12 = vector.load %arg8[%c0_9, %c0_10, %c0_11] : memref<4x32x8xbf16, #tpu.memory_space<vmem>>, vector<4x32x8xbf16>
    %cst_12 = arith.constant dense<0.000000e+00> : vector<4x8x8xf32>
    %13 = tpu.matmul %6, %12, %cst_12 {dimension_numbers = #tpu.dot_dimension_numbers<[2], [1], [1], [2], [0, 0, 0, 1, 1, 2], [0], [0]>} : vector<4x8x32xbf16>, vector<4x32x8xbf16>, vector<4x8x8xf32> -> vector<4x8x8xf32>
    %c0_13 = arith.constant 0 : index
    %c0_14 = arith.constant 0 : index
    %c0_15 = arith.constant 0 : index
    %14 = vector.load %arg9[%c0_13, %c0_14, %c0_15] : memref<4x1x8xf32, #tpu.memory_space<vmem>>, vector<4x1x8xf32>
    %15 = vector.broadcast %14 : vector<4x1x8xf32> to vector<4x8x8xf32>
    %16 = arith.addf %13, %15 : vector<4x8x8xf32>
    %17 = arith.truncf %11 : vector<4x8x8xf32> to vector<4x8x8xbf16>
    %18 = arith.truncf %16 : vector<4x8x8xf32> to vector<4x8x8xbf16>
    %c0_16 = arith.constant 0 : index
    %c0_17 = arith.constant 0 : index
    %c0_18 = arith.constant 0 : index
    %19 = vector.load %arg13[%c0_16, %c0_17, %c0_18] : memref<4x8x8xbf16, #tpu.memory_space<vmem>>, vector<4x8x8xbf16>
    %cst_19 = arith.constant dense<0.000000e+00> : vector<4x8x8xf32>
    %20 = tpu.matmul %19, %17, %cst_19 {dimension_numbers = #tpu.dot_dimension_numbers<[2], [2], [1], [1], [0, 0, 0, 1, 1, 1], [0], [0]>} : vector<4x8x8xbf16>, vector<4x8x8xbf16>, vector<4x8x8xf32> -> vector<4x8x8xf32>
    %21 = tpu.iota {dimensions = array<i32: 1>} : vector<4x8x8xi32>
    %22 = tpu.iota {dimensions = array<i32: 2>} : vector<4x8x8xi32>
    %c8_i32 = arith.constant 8 : i32
    %23 = arith.muli %arg1, %c8_i32 : i32
    %24 = vector.broadcast %23 : i32 to vector<4x8x8xi32>
    %25 = arith.addi %22, %24 : vector<4x8x8xi32>
    %26 = arith.cmpi sge, %21, %25 : vector<4x8x8xi32>
    %cst_20 = arith.constant -1.000000e+30 : f32
    %27 = vector.broadcast %cst_20 : f32 to vector<4x8x8xf32>
    %28 = arith.select %26, %20, %27 : vector<4x8x8xi1>, vector<4x8x8xf32>
    %c0_21 = arith.constant 0 : index
    %c0_22 = arith.constant 0 : index
    %c0_23 = arith.constant 0 : index
    %29 = vector.load %arg14[%c0_21, %c0_22, %c0_23] : memref<4x8x1xf32, #tpu.memory_space<vmem>>, vector<4x8x1xf32>
    %cst_24 = arith.constant dense<0xFF800000> : vector<4x8xf32>
    %30 = vector.multi_reduction <maximumf>, %28, %cst_24 [2] : vector<4x8x8xf32> to vector<4x8xf32>
    %31 = vector.shape_cast %30 : vector<4x8xf32> to vector<4x8x1xf32>
    %32 = arith.maximumf %29, %31 : vector<4x8x1xf32>
    %33 = arith.subf %29, %32 : vector<4x8x1xf32>
    %34 = math.exp %33 : vector<4x8x1xf32>
    %35 = vector.broadcast %32 : vector<4x8x1xf32> to vector<4x8x8xf32>
    %36 = arith.subf %28, %35 : vector<4x8x8xf32>
    %37 = math.exp %36 : vector<4x8x8xf32>
    %c0_25 = arith.constant 0 : index
    %c0_26 = arith.constant 0 : index
    %c0_27 = arith.constant 0 : index
    %38 = vector.load %arg15[%c0_25, %c0_26, %c0_27] : memref<4x8x1xf32, #tpu.memory_space<vmem>>, vector<4x8x1xf32>
    %39 = arith.mulf %34, %38 : vector<4x8x1xf32>
    %cst_28 = arith.constant dense<0.000000e+00> : vector<4x8xf32>
    %40 = vector.multi_reduction <add>, %37, %cst_28 [2] : vector<4x8x8xf32> to vector<4x8xf32>
    %41 = vector.shape_cast %40 : vector<4x8xf32> to vector<4x8x1xf32>
    %42 = arith.addf %39, %41 : vector<4x8x1xf32>
    %c0_29 = arith.constant 0 : index
    %c0_30 = arith.constant 0 : index
    %c0_31 = arith.constant 0 : index
    %43 = vector.load %arg15[%c0_29, %c0_30, %c0_31] : memref<4x8x1xf32, #tpu.memory_space<vmem>>, vector<4x8x1xf32>
    tpu.vector_store %arg15[%c0_29, %c0_30, %c0_31], %42 {strides = array<i32>} : memref<4x8x1xf32, #tpu.memory_space<vmem>>, vector<4x8x1xf32>,
    %c0_32 = arith.constant 0 : index
    %c0_33 = arith.constant 0 : index
    %c0_34 = arith.constant 0 : index
    %44 = vector.load %arg16[%c0_32, %c0_33, %c0_34] : memref<4x8x8xf32, #tpu.memory_space<vmem>>, vector<4x8x8xf32>
    %45 = vector.broadcast %34 : vector<4x8x1xf32> to vector<4x8x8xf32>
    %46 = arith.mulf %45, %44 : vector<4x8x8xf32>
    %47 = arith.truncf %37 : vector<4x8x8xf32> to vector<4x8x8xbf16>
    %cst_35 = arith.constant dense<0.000000e+00> : vector<4x8x8xf32>
    %48 = tpu.matmul %47, %18, %cst_35 {dimension_numbers = #tpu.dot_dimension_numbers<[2], [1], [1], [2], [0, 0, 0, 1, 1, 2], [0], [0]>} : vector<4x8x8xbf16>, vector<4x8x8xbf16>, vector<4x8x8xf32> -> vector<4x8x8xf32>
    %49 = arith.addf %46, %48 : vector<4x8x8xf32>
    %c0_36 = arith.constant 0 : index
    %c0_37 = arith.constant 0 : index
    %c0_38 = arith.constant 0 : index
    %50 = vector.load %arg16[%c0_36, %c0_37, %c0_38] : memref<4x8x8xf32, #tpu.memory_space<vmem>>, vector<4x8x8xf32>
    tpu.vector_store %arg16[%c0_36, %c0_37, %c0_38], %49 {strides = array<i32>} : memref<4x8x8xf32, #tpu.memory_space<vmem>>, vector<4x8x8xf32>,
    %c0_39 = arith.constant 0 : index
    %c0_40 = arith.constant 0 : index
    %c0_41 = arith.constant 0 : index
    %51 = vector.load %arg14[%c0_39, %c0_40, %c0_41] : memref<4x8x1xf32, #tpu.memory_space<vmem>>, vector<4x8x1xf32>
    tpu.vector_store %arg14[%c0_39, %c0_40, %c0_41], %32 {strides = array<i32>} : memref<4x8x1xf32, #tpu.memory_space<vmem>>, vector<4x8x1xf32>,
    %c0_i32_42 = arith.constant 0 : i32
    %52 = arith.cmpi eq, %arg1, %c0_i32_42 : i32
    %53 = arith.extui %52 : i1 to i32
    %c0_i32_43 = arith.constant 0 : i32
    %54 = arith.cmpi ne, %53, %c0_i32_43 : i32
    scf.if %54 {
      %c0_44 = arith.constant 0 : index
      %c0_45 = arith.constant 0 : index
      %c0_46 = arith.constant 0 : index
      %55 = vector.load %arg16[%c0_44, %c0_45, %c0_46] : memref<4x8x8xf32, #tpu.memory_space<vmem>>, vector<4x8x8xf32>
      %c0_47 = arith.constant 0 : index
      %c0_48 = arith.constant 0 : index
      %c0_49 = arith.constant 0 : index
      %56 = vector.load %arg15[%c0_47, %c0_48, %c0_49] : memref<4x8x1xf32, #tpu.memory_space<vmem>>, vector<4x8x1xf32>
      %57 = tpu.reciprocal %56 {approx = true} : vector<4x8x1xf32> -> vector<4x8x1xf32>
      %58 = vector.broadcast %57 : vector<4x8x1xf32> to vector<4x8x8xf32>
      %59 = arith.mulf %55, %58 : vector<4x8x8xf32>
      %60 = arith.truncf %59 : vector<4x8x8xf32> to vector<4x8x8xbf16>
      %c0_50 = arith.constant 0 : index
      %c0_51 = arith.constant 0 : index
      %c0_52 = arith.constant 0 : index
      %61 = vector.load %arg10[%c0_50, %c0_51, %c0_52] : memref<4x8x32xbf16, #tpu.memory_space<vmem>>, vector<4x8x32xbf16>
      %cst_53 = arith.constant dense<0.000000e+00> : vector<4x8x32xf32>
      %62 = tpu.matmul %60, %61, %cst_53 {dimension_numbers = #tpu.dot_dimension_numbers<[2], [1], [1], [2], [0, 0, 0, 1, 1, 2], [0], [0]>} : vector<4x8x8xbf16>, vector<4x8x32xbf16>, vector<4x8x32xf32> -> vector<4x8x32xf32>
      %cst_54 = arith.constant dense<0.000000e+00> : vector<8x32xf32>
      %63 = vector.multi_reduction <add>, %62, %cst_54 [0] : vector<4x8x32xf32> to vector<8x32xf32>
      %c0_55 = arith.constant 0 : index
      %c0_56 = arith.constant 0 : index
      %64 = vector.load %arg11[%c0_55, %c0_56] : memref<1x32xf32, #tpu.memory_space<vmem>>, vector<1x32xf32>
      %65 = vector.broadcast %64 : vector<1x32xf32> to vector<8x32xf32>
      %66 = arith.addf %63, %65 : vector<8x32xf32>
      %c0_57 = arith.constant 0 : index
      %c0_58 = arith.constant 0 : index
      %c0_59 = arith.constant 0 : index
      %67 = vector.load %arg12[%c0_57, %c0_58, %c0_59] : memref<1x8x32xf32, #tpu.memory_space<vmem>>, vector<1x8x32xf32>
      %68 = vector.shape_cast %67 : vector<1x8x32xf32> to vector<8x32xf32>
      %69 = vector.shape_cast %66 : vector<8x32xf32> to vector<1x8x32xf32>
      tpu.vector_store %arg12[%c0_57, %c0_58, %c0_59], %69 {strides = array<i32>} : memref<1x8x32xf32, #tpu.memory_space<vmem>>, vector<1x8x32xf32>,
    } else {
    }
    return
  }
  func.func @transform_0(%arg0: i32, %arg1: i32) -> (i32, i32, i32) {
    %c0_i32 = arith.constant 0 : i32
    %c0_i32_0 = arith.constant 0 : i32
    %c0_i32_1 = arith.constant 0 : i32
    return %arg0, %c0_i32, %c0_i32_0 : i32, i32, i32
  }
  func.func @transform_1(%arg0: i32, %arg1: i32) -> (i32, i32, i32) {
    %c0_i32 = arith.constant 0 : i32
    %c0_i32_0 = arith.constant 0 : i32
    return %arg0, %arg1, %c0_i32 : i32, i32, i32
  }
  func.func @transform_2(%arg0: i32, %arg1: i32) -> (i32, i32, i32) {
    %c0_i32 = arith.constant 0 : i32
    %c0_i32_0 = arith.constant 0 : i32
    %c0_i32_1 = arith.constant 0 : i32
    %c0_i32_2 = arith.constant 0 : i32
    return %c0_i32, %c0_i32_0, %c0_i32_1 : i32, i32, i32
  }
  func.func @transform_3(%arg0: i32, %arg1: i32) -> (i32, i32, i32) {
    %c0_i32 = arith.constant 0 : i32
    %c0_i32_0 = arith.constant 0 : i32
    %c0_i32_1 = arith.constant 0 : i32
    %c0_i32_2 = arith.constant 0 : i32
    return %c0_i32, %c0_i32_0, %c0_i32_1 : i32, i32, i32
  }
  func.func @transform_4(%arg0: i32, %arg1: i32) -> (i32, i32, i32) {
    %c0_i32 = arith.constant 0 : i32
    %c0_i32_0 = arith.constant 0 : i32
    %c0_i32_1 = arith.constant 0 : i32
    %c0_i32_2 = arith.constant 0 : i32
    return %c0_i32, %c0_i32_0, %c0_i32_1 : i32, i32, i32
  }
  func.func @transform_5(%arg0: i32, %arg1: i32) -> (i32, i32, i32) {
    %c0_i32 = arith.constant 0 : i32
    %c0_i32_0 = arith.constant 0 : i32
    %c0_i32_1 = arith.constant 0 : i32
    %c0_i32_2 = arith.constant 0 : i32
    return %c0_i32, %c0_i32_0, %c0_i32_1 : i32, i32, i32
  }
  func.func @transform_6(%arg0: i32, %arg1: i32) -> (i32, i32, i32) {
    %c0_i32 = arith.constant 0 : i32
    %c0_i32_0 = arith.constant 0 : i32
    %c0_i32_1 = arith.constant 0 : i32
    %c0_i32_2 = arith.constant 0 : i32
    return %c0_i32, %c0_i32_0, %c0_i32_1 : i32, i32, i32
  }
  func.func @transform_7(%arg0: i32, %arg1: i32) -> (i32, i32, i32) {
    %c0_i32 = arith.constant 0 : i32
    %c0_i32_0 = arith.constant 0 : i32
    %c0_i32_1 = arith.constant 0 : i32
    %c0_i32_2 = arith.constant 0 : i32
    return %c0_i32, %c0_i32_0, %c0_i32_1 : i32, i32, i32
  }
  func.func @transform_8(%arg0: i32, %arg1: i32) -> (i32, i32, i32) {
    %c0_i32 = arith.constant 0 : i32
    %c0_i32_0 = arith.constant 0 : i32
    %c0_i32_1 = arith.constant 0 : i32
    %c0_i32_2 = arith.constant 0 : i32
    return %c0_i32, %c0_i32_0, %c0_i32_1 : i32, i32, i32
  }
  func.func @transform_9(%arg0: i32, %arg1: i32) -> (i32, i32) {
    %c0_i32 = arith.constant 0 : i32
    %c0_i32_0 = arith.constant 0 : i32
    %c0_i32_1 = arith.constant 0 : i32
    return %c0_i32, %c0_i32_0 : i32, i32
  }
  func.func @transform_10(%arg0: i32, %arg1: i32) -> (i32, i32, i32) {
    %c0_i32 = arith.constant 0 : i32
    %c0_i32_0 = arith.constant 0 : i32
    %c0_i32_1 = arith.constant 0 : i32
    return %arg0, %c0_i32, %c0_i32_0 : i32, i32, i32
  }
}

</mosaic_0001>

<bundles_post_ra>
// kernel: tpu_custom_call.1
= control target key start
LH: loop header
LB: loop body
LE: loop exit
PB: predicated region body
PF: predicated region fallthrough
CT: control target
= control target key end

     0   :  { %15 = vsyncpa [#allocation7], 0  ;;  %s2098_s0 = inlined_call_operand.vmem [shape: bf16[2,8,32], index: 0, kind: input, shape index: {}]   ;;  %s2099_s1 = inlined_call_operand.vmem [shape: bf16[2,8,32], index: 1, kind: input, shape index: {}]   ;;  %s2100_s2 = inlined_call_operand.vmem [shape: bf16[4,32,8], index: 2, kind: input, shape index: {}]   ;;  %s2101_s3 = inlined_call_operand.vmem [shape: f32[4,1,8], index: 3, kind: input, shape index: {}]   ;;  %s2102_s4 = inlined_call_operand.vmem [shape: bf16[4,32,8], index: 4, kind: input, shape index: {}]   ;;  %s2103_s5 = inlined_call_operand.vmem [shape: f32[4,1,8], index: 5, kind: input, shape index: {}]   ;;  %s2104_s6 = inlined_call_operand.vmem [shape: bf16[4,32,8], index: 6, kind: input, shape index: {}]   ;;  %s2105_s7 = inlined_call_operand.vmem [shape: f32[4,1,8], index: 7, kind: input, shape index: {}]   ;;  %s2106_s8 = inlined_call_operand.vmem [shape: bf16[4,8,32], index: 8, kind: input, shape index: {}]   ;;  %s2107_s9 = inlined_call_operand.vmem [shape: f32[1,32], index: 9, kind: input, shape index: {}]   ;;  %s2108_s10 = inlined_call_operand.hbm [shape: f32[2,8,32], index: 10, kind: output, shape index: {}]  }
   0x1   :  { %17 = vsyncpa [#allocation7 + $0x1], 0  ;;  %s1770_s13 = smov 0   ;;  %s1772_s14 = smov 0  }
   0x2   :  { %s1774_s15 = smov 0   ;;  %s1776_s16 = smov 0  }
   0x3   :  { %s1778_s17 = smov 0   ;;  %s1780_s18 = smov 0  }
   0x4 LB: > { %2111 = sst [smem:[#allocation9_spill]] %s1706_s17  ;;  %s1378_s19 = sadd.s32 4294967295, %s1710_s18   ;;  %s1710_s18 = sphi %s1780_s18, %s23_s18   ;;  %s1706_s17 = sphi %s1778_s17, %s2118_s17   ;;  %s1702_s16 = sphi %s1776_s16, %s2117_s16   ;;  %s1698_s15 = sphi %s1774_s15, %s2121_s15   ;;  %s1694_s14 = sphi %s1772_s14, %s2120_s14   ;;  %s1690_s13 = sphi %s1770_s13, %s2119_s13  }
   0x5   : > { %s1379_s20 = sadd.s32 4294967294, %s1710_s18   ;;  %s35_s21 = sadd.s32 1, %s1706_s17 }
   0x6   : > { %s264_s22 = sadd.s32 1, %s1698_s15  ;;  %p37_p0 = scmp.ge.s32.totalorder %s35_s21, 2 }
   0x7   : > { %p274_p1 = scmp.ne.s32.totalorder %s1698_s15, %s1694_s14  ;;  %p275_p2 = scmp.eq.s32.totalorder %s1378_s19, 1 }
   0x8   : > { %p280_p3 = scmp.ne.s32.totalorder %s1694_s14, %s1690_s13  ;;  %s2123_s21 = smov (%p37_p0, %s35_s21), 0 }
   0x9   : > { %2112 = sst [smem:[#allocation10_spill]] %s2123_s21  ;;  %p1810_p4 = por %p275_p2, %p274_p1 }
   0xa   : > { %p281_p5 = scmp.eq.s32.totalorder %s1379_s20, 1  ;;  %s261_s24 = ssub.s32 %s1706_s17, %s2123_s21 }
   0xb   : > { %p1382_p6 = scmp.ge.s32.totalorder %s1710_s18, 1  ;;  %p262_p7 = scmp.eq.s32.totalorder %s261_s24, 0 }
   0xc   : > { %p1817_p8 = por %p281_p5, %p280_p3  ;;  %p340_p9 = scmp.lt.s32.totalorder %s1710_s18, 3 }
   0xd   : > { %s1823_s26 = scalar_select %p262_p7, %s1698_s15, %s264_s22  }
   0xe   : > { %p341_p10 = pnand %p1382_p6, %p340_p9 }
   0xf   : > { %2115 = sst [smem:[#allocation11_spill]] %s1823_s26  ;;  %p384_p11 = scmp.lt.s32.totalorder (!%p341_p10), %s1702_s16, 1 }
  0x10   : > { %344 = sbr.rel (%p341_p10) target bundleno = 946 (0x3b2), region = 60  ;;  %s381_s28 = sand.u32 (!%p341_p10), 1, %s1694_s14  }
  0x11   : > { %s1383_s30 = sshll.u32 (!%p341_p10), %s381_s28, 3  ;;  %s1507_s11 = sshll.u32 (!%p341_p10), %s1702_s16, 3 }
  0x12   : > { %s1291_s12 = scalar_lea.hbm (!%p341_p10), %s2108_s10, %s1507_s11  ;;  %s1281_s17 = scalar_lea.sflag (!%p341_p10), [#allocation7], %s381_s28 }
  0x13   : > { %s1295_s24 = sshll.u32 (!%p341_p10), %s1291_s12, 4  ;;  %s1296_s24 = int_to_ptr.hbm [resolvable:$true] %s1295_s24 }
  0x15   : > { %v1511_v0 = vld [vmem:[%s2100_s2 + $0x8] sm:$0xff]  ;;  %v1513_v1 = vld [vmem:[%s2100_s2 + $0x18] sm:$0xff]  ;;  %v1510_v3 = vld [vmem:[%s2100_s2] sm:$0xff]  ;;  %s1845_s29 = scalar_select %p384_p11, %s1702_s16, 1  ;;  %vm445_vm0 = vcmask 261120   ;;  %vm541_vm1 = vcmask 60416  }
  0x16   : > { %v1515_v2 = vld [vmem:[%s2100_s2 + $0x28] sm:$0xff]  ;;  %455 = vmatpush.bf16.msra.mxu0 %v1511_v0  ;;  %480 = vmatpush.bf16.msra.mxu1 %v1513_v1  ;;  %v1512_v4 = vld [vmem:[%s2100_s2 + $0x10] sm:$0xff]  ;;  %v1517_v5 = vld [vmem:[%s2100_s2 + $0x38] sm:$0xff]  ;;  %vm555_vm2 = vcmask 64512   ;;  %vm1058_vm3 = vcmask 1043456   ;;  %vm546_vm4 = vcmask 7168  }
  0x17   : > { %505 = vmatpush.bf16.msra.mxu2 %v1515_v2  ;;  %v1514_v6 = vld [vmem:[%s2100_s2 + $0x20] sm:$0xff]  ;;  %v1519_v7 = vld [vmem:[%s2102_s4 + $0x8] sm:$0xff]  ;;  %530 = vmatpush.bf16.msra.mxu3 %v1517_v5  ;;  %s1384_s19 = sshll.u32 %s1845_s29, 2  ;;  %v1516_v8 = vld [vmem:[%s2100_s2 + $0x30] sm:$0xff]  ;;  %s383_s16 = scalar_lea.vmem [#allocation6], %s1383_s30 }
  0x18   : > { %v1521_v9 = vld [vmem:[%s2102_s4 + $0x18] sm:$0xff]  ;;  %s387_s26 = scalar_lea.vmem %s2098_s0, %s1384_s19  ;;  %v1523_v10 = vld [vmem:[%s2102_s4 + $0x28] sm:$0xff]  ;;  %v1518_v12 = vld [vmem:[%s2102_s4] sm:$0xff]  ;;  %s394_s21 = scalar_lea.vmem %s2099_s1, %s1384_s19 }
  0x19   : > { %v400_v11 = vld [vmem:[%s387_s26] sm:$0xf]  ;;  %v1520_v13 = vld [vmem:[%s2102_s4 + $0x10] sm:$0xff]  ;;  %v1525_v14 = vld [vmem:[%s2102_s4 + $0x38] sm:$0xff]  ;;  %s1293_s19 = sshll.u32 %s383_s16, 4  ;;  %s1646_s26 = sshra.s32 %s1296_s24, 4  ;;  %s1294_s19 = int_to_ptr.vmem [resolvable:$true] %s1293_s19  ;;  %s1647_s26 = int_to_ptr.hbm [resolvable:$true] %s1646_s26 }
  0x1a   : > { %456 = vmatpush.bf16.msra.mxu0 %v1510_v3  ;;  %481 = vmatpush.bf16.msra.mxu1 %v1512_v4  ;;  %v1524_v15 = vld [vmem:[%s2102_s4 + $0x30] sm:$0xff]  ;;  %v1522_v16 = vld [vmem:[%s2102_s4 + $0x20] sm:$0xff]  ;;  %v1527_v18 = vld [vmem:[%s2104_s6 + $0x8] sm:$0xff]  ;;  %s1648_s27 = scalar_lea.hbm %s1647_s26, 8  ;;  %s1652_s30 = scalar_lea.hbm %s2108_s10, 16 }
  0x1b   : > { %506 = vmatpush.bf16.msra.mxu2 %v1514_v6  ;;  %531 = vmatpush.bf16.msra.mxu3 %v1516_v8  ;;  %v560_v17 = vld [vmem:[%s394_s21] sm:$0xf]  ;;  %v1529_v20 = vld [vmem:[%s2104_s6 + $0x18] sm:$0xff]  ;;  %v1528_v21 = vld [vmem:[%s2104_s6 + $0x10] sm:$0xff]  ;;  %p1649_p12 = scmp.ne.s32.totalorder %s1647_s26, %s1648_s27  ;;  %p1653_p1 = scmp.lt.s32.totalorder %s1647_s26, %s2108_s10 }
  0x1c   : > { %v1526_v19 = vld [vmem:[%s2104_s6] sm:$0xff]  ;;  %v1531_v22 = vld [vmem:[%s2104_s6 + $0x28] sm:$0xff]  ;;  %v1533_v24 = vld [vmem:[%s2104_s6 + $0x38] sm:$0xff]  ;;  %p1654_p2 = scmp.lt.s32.totalorder %s1652_s30, %s1648_s27 }
  0x1d   : > { %1394 = vmatmul.msk.bf16.vlgmr.msra.gmra.mxu0 %vm445_vm0, %v400_v11  ;;  %1403 = vmatmul.msk.bf16.vlgmr.msra.gmra.mxu1 %vm445_vm0, %v400_v11  ;;  %v1530_v23 = vld [vmem:[%s2104_s6 + $0x20] sm:$0xff]  ;;  %v1532_v25 = vld [vmem:[%s2104_s6 + $0x30] sm:$0xff]  ;;  %p1650_p13 = pnand %p1649_p12, %p1810_p4 }
  0x1e   : > { %615 = vmatpush.bf16.msrb.mxu0 %v1519_v7  ;;  %640 = vmatpush.bf16.msrb.mxu1 %v1521_v9  ;;  %v1595_v26 = vld [vmem:[%s2101_s3] ss:$0 sm:$0xff]  ;;  %v1596_v27 = vld [vmem:[%s2101_s3 + $0x1] ss:$0 sm:$0xff]  ;;  %v1597_v34 = vld [vmem:[%s2101_s3 + $0x2] ss:$0 sm:$0xff]  ;;  %p1655_p3 = por %p1654_p2, %p1653_p1 }
  0x1f   : > { %1412 = vmatmul.msk.bf16.vlgmr.msra.gmra.mxu2 %vm445_vm0, %v400_v11  ;;  %690 = vmatpush.bf16.msrb.mxu3 %v1525_v14  ;;  %v1598_v35 = vld [vmem:[%s2101_s3 + $0x3] ss:$0 sm:$0xff]  ;;  %v1599_v44 = vld [vmem:[%s2103_s5] ss:$0 sm:$0xff]  ;;  %v1600_v45 = vld [vmem:[%s2103_s5 + $0x1] ss:$0 sm:$0xff]  ;;  %p1651_p0 = pneg %p1650_p13 }
  0x20   : > { %1421 = vmatmul.msk.bf16.vlgmr.msra.gmra.mxu3 %vm445_vm0, %v400_v11  ;;  %665 = vmatpush.bf16.msrb.mxu2 %v1523_v10  ;;  %v1601_v54 = vld [vmem:[%s2103_s5 + $0x2] ss:$0 sm:$0xff]  ;;  %v1602_v57 = vld [vmem:[%s2103_s5 + $0x3] ss:$0 sm:$0xff]  ;;  %v1603_v10 = vld [vmem:[%s2105_s7] ss:$0 sm:$0xff] }
  0x21   : > { %p1656_p5 = pnand %p1655_p3, %p1651_p0 }
  0x22   : > { %616 = vmatpush.bf16.msrb.mxu0 %v1518_v12  ;;  %641 = vmatpush.bf16.msrb.mxu1 %v1520_v13 }
  0x23   : > { %691 = vmatpush.bf16.msrb.mxu3 %v1524_v15  ;;  %v1604_v15 = vld [vmem:[%s2105_s7 + $0x1] ss:$0 sm:$0xff] }
  0x24   : > { %666 = vmatpush.bf16.msrb.mxu2 %v1522_v16 }
  0x26   : > { %747 = vmatpush.bf16.msra.mxu0 %v1527_v18  ;;  %772 = vmatpush.bf16.msra.mxu1 %v1529_v20 }
  0x27   : > { %822 = vmatpush.bf16.msra.mxu3 %v1533_v24 }
  0x28   : > { %797 = vmatpush.bf16.msra.mxu2 %v1531_v22  ;;  %v1605_v22 = vld [vmem:[%s2105_s7 + $0x2] ss:$0 sm:$0xff] }
  0x2a   : > { %748 = vmatpush.bf16.msra.mxu0 %v1526_v19  ;;  %773 = vmatpush.bf16.msra.mxu1 %v1528_v21 }
  0x2b   : > { %823 = vmatpush.bf16.msra.mxu3 %v1532_v25  ;;  %v1606_v25 = vld [vmem:[%s2105_s7 + $0x3] ss:$0 sm:$0xff] }
  0x2c   : > { %798 = vmatpush.bf16.msra.mxu2 %v1530_v23 }
  0x2d   : > { %1430 = vmatmul.msk.bf16.vlgmr.msrb.gmra.mxu0 %vm445_vm0, %v560_v17  ;;  %1439 = vmatmul.msk.bf16.vlgmr.msrb.gmra.mxu1 %vm445_vm0, %v560_v17 }
  0x2f   : > { %1448 = vmatmul.msk.bf16.vlgmr.msrb.gmra.mxu2 %vm445_vm0, %v560_v17 }
  0x30   : > { %1457 = vmatmul.msk.bf16.vlgmr.msrb.gmra.mxu3 %vm445_vm0, %v560_v17 }
  0x3d   : > { %1466 = vmatmul.msk.bf16.vlgmr.msra.gmra.mxu0 %vm445_vm0, %v560_v17  ;;  %1475 = vmatmul.msk.bf16.vlgmr.msra.gmra.mxu1 %vm445_vm0, %v560_v17 }
  0x3f   : > { %1484 = vmatmul.msk.bf16.vlgmr.msra.gmra.mxu2 %vm445_vm0, %v560_v17 }
  0x40   : > { %1493 = vmatmul.msk.bf16.vlgmr.msra.gmra.mxu3 %vm445_vm0, %v560_v17 }
  0x9a   : > { %v458_v28 = vpop.f32.mrf.mxu0  ;;  %v483_v29 = vpop.f32.mrf.mxu1 }
  0x9b   : > { %v459_v30 = vadd.f32 %v1595_v26, %v458_v28  ;;  %v484_v31 = vadd.f32 %v1596_v27, %v483_v29 }
  0x9d   : > { %v537_v32 = vpack.c.bf16 %v459_v30, %v459_v30  ;;  %v538_v33 = vpack.c.bf16 %v484_v31, %v484_v31 }
  0x9f   : > { %542 = vst.msk [vmem:[#allocation2] sm:$0xf] %vm541_vm1, %v537_v32 }
  0xa0   : > { %543 = vst.msk [vmem:[#allocation2 + $0x4] sm:$0xf] %vm541_vm1, %v538_v33 }
  0xa2   : > { %v508_v36 = vpop.f32.mrf.mxu2  ;;  %v460_v38 = vpop.f32.mrf.mxu0 }
  0xa3   : > { %v509_v37 = vadd.f32 %v1597_v34, %v508_v36  ;;  %v485_v39 = vpop.f32.mrf.mxu1  ;;  %v533_v40 = vpop.f32.mrf.mxu3  ;;  %v918_v34 = vlaneseq }
  0xa4   : > { %v534_v42 = vadd.f32 %v1598_v35, %v533_v40  ;;  %v1712_v35 = vmov -1e+30  }
  0xa5   : > { %v539_v41 = vpack.c.bf16 %v509_v37, %v509_v37  ;;  %547 = vst.msk [vmem:[#allocation3] sm:$0xff] %vm546_vm4, %v1712_v35  ;;  %v919_v36 = vshrl.u32 %v918_v34, 7  ;;  %v921_v37 = vand.u32 127, %v918_v34 }
  0xa6   : > { %v540_v43 = vpack.c.bf16 %v534_v42, %v534_v42  ;;  %v837_v4 = vld [vmem:[#allocation2] sm:$0xf]  ;;  %548 = vst.msk [vmem:[#allocation3 + $0x8] sm:$0xff] %vm546_vm4, %v1712_v35 }
  0xa7   : > { %544 = vst.msk [vmem:[#allocation2 + $0x8] sm:$0xf] %vm541_vm1, %v539_v41  ;;  %v838_v1 = vld [vmem:[#allocation2 + $0x4] sm:$0xf]  ;;  %vm925_vm5 = vcmp.ge.s32.totalorder %v919_v36, %v921_v37 }
  0xa8   : > { %545 = vst.msk [vmem:[#allocation2 + $0xc] sm:$0xf] %vm541_vm1, %v540_v43 }
  0xa9   : > { %549 = vst.msk [vmem:[#allocation3 + $0x10] sm:$0xff] %vm546_vm4, %v1712_v35 }
  0xaa   : > { %v510_v46 = vpop.f32.mrf.mxu2  ;;  %v618_v47 = vpop.f32.mrf.mxu0  ;;  %550 = vst.msk [vmem:[#allocation3 + $0x18] sm:$0xff] %vm546_vm4, %v1712_v35 }
  0xab   : > { %v643_v48 = vpop.f32.mrf.mxu1  ;;  %v619_v49 = vadd.f32 %v1599_v44, %v618_v47  ;;  %v535_v51 = vpop.f32.mrf.mxu3 }
  0xac   : > { %v644_v50 = vadd.f32 %v1600_v45, %v643_v48 }
  0xad   : > { %v829_v52 = vpack.c.bf16 %v619_v49, %v619_v49 }
  0xae   : > { %v830_v53 = vpack.c.bf16 %v644_v50, %v644_v50  ;;  %v839_v8 = vld [vmem:[#allocation2 + $0x8] sm:$0xf] }
  0xaf   : > { %v846_v55 = vsel %vm555_vm2, %v829_v52, 0  ;;  %v840_v9 = vld [vmem:[#allocation2 + $0xc] sm:$0xf] }
  0xb0   : > { %v865_v56 = vsel %vm555_vm2, %v830_v53, 0  ;;  %855 = vmatpush.bf16.xpose.msrb.mxu0 %v846_v55  ;;  %v1714_v55 = vmov 0.0  }
  0xb1   : > { %874 = vmatpush.bf16.xpose.msrb.mxu1 %v865_v56  ;;  %553 = vst.msk [vmem:[#allocation4 + $0x10] sm:$0xff] %vm546_vm4, %v1714_v55  ;;  %v1998_v56 = vld [vmem:[#allocation3] sm:$0xff] }
  0xb2   : > { %v668_v58 = vpop.f32.mrf.mxu2  ;;  %v620_v60 = vpop.f32.mrf.mxu0  ;;  %551 = vst.msk [vmem:[#allocation4] sm:$0xff] %vm546_vm4, %v1714_v55 }
  0xb3   : > { %v669_v59 = vadd.f32 %v1601_v54, %v668_v58  ;;  %v645_v61 = vpop.f32.mrf.mxu1  ;;  %v693_v62 = vpop.f32.mrf.mxu3  ;;  %v1713_v54 = vmov 0   ;;  %552 = vst.msk [vmem:[#allocation4 + $0x8] sm:$0xff] %vm546_vm4, %v1714_v55  ;;  %v2008_v60 = vld [vmem:[#allocation3 + $0x8] sm:$0xff] }
  0xb4   : > { %v694_v0 = vadd.f32 %v1602_v57, %v693_v62  ;;  %1593 = vset.pattern.permute.xlu0 %v1713_v54  ;;  %1594 = vset.pattern.permute.xlu1 %v1713_v54  ;;  %554 = vst.msk [vmem:[#allocation4 + $0x18] sm:$0xff] %vm546_vm4, %v1714_v55 }
  0xb5   : > { %v831_v63 = vpack.c.bf16 %v669_v59, %v669_v59  ;;  %1592 = vset.pattern.permute.xlu2 %v1713_v54  ;;  %556 = vst.msk [vmem:[#allocation5] sm:$0xff] %vm555_vm2, %v1714_v55 }
  0xb6   : > { %v832_v3 = vpack.c.bf16 %v694_v0, %v694_v0  ;;  %557 = vst.msk [vmem:[#allocation5 + $0x8] sm:$0xff] %vm555_vm2, %v1714_v55  ;;  %v932_v0 = vld [vmem:[#allocation3 + $0x10] sm:$0xff] }
  0xb7   : > { %v884_v2 = vsel %vm555_vm2, %v831_v63, 0  ;;  %1494 = vmatmul.msk.bf16.vlgmr.msrb.gmra.mxu0 %vm555_vm2, %v837_v4  ;;  %558 = vst.msk [vmem:[#allocation5 + $0x10] sm:$0xff] %vm555_vm2, %v1714_v55  ;;  %v933_v4 = vld [vmem:[#allocation3 + $0x18] sm:$0xff] }
  0xb8   : > { %893 = vmatpush.bf16.xpose.msrb.mxu2 %v884_v2  ;;  %v903_v5 = vsel %vm555_vm2, %v832_v3, 0  ;;  %1495 = vmatmul.msk.bf16.vlgmr.msrb.gmra.mxu1 %vm555_vm2, %v838_v1  ;;  %559 = vst.msk [vmem:[#allocation5 + $0x18] sm:$0xff] %vm555_vm2, %v1714_v55 }
  0xb9   : > { %912 = vmatpush.bf16.xpose.msrb.mxu3 %v903_v5 }
  0xba   : > { %v670_v6 = vpop.f32.mrf.mxu2  ;;  %v750_v11 = vpop.f32.mrf.mxu0 }
  0xbb   : > { %v695_v7 = vpop.f32.mrf.mxu3  ;;  %v751_v12 = vadd.f32 %v1603_v10, %v750_v11  ;;  %v775_v16 = vpop.f32.mrf.mxu1 }
  0xbc   : > { %v776_v18 = vadd.f32 %v1604_v15, %v775_v16 }
  0xbd   : > { %v833_v13 = vpack.c.bf16 %v751_v12, %v751_v12 }
  0xbe   : > { %v834_v19 = vpack.c.bf16 %v776_v18, %v776_v18 }
  0xbf   : > { %1496 = vmatmul.msk.bf16.vlgmr.msrb.gmra.mxu2 %vm555_vm2, %v839_v8  ;;  %v1060_v14 = vsel %vm1058_vm3, %v833_v13, 0 }
  0xc0   : > { %1497 = vmatmul.msk.bf16.vlgmr.msrb.gmra.mxu3 %vm555_vm2, %v840_v9  ;;  %1069 = vmatpush.bf16.msra.mxu0 %v1060_v14  ;;  %v1079_v20 = vsel %vm1058_vm3, %v834_v19, 0 }
  0xc1   : > { %1088 = vmatpush.bf16.msra.mxu1 %v1079_v20 }
  0xc2   : > { %v752_v17 = vpop.f32.mrf.mxu0  ;;  %v800_v23 = vpop.f32.mrf.mxu2 }
  0xc3   : > { %v777_v21 = vpop.f32.mrf.mxu1  ;;  %v801_v24 = vadd.f32 %v1605_v22, %v800_v23  ;;  %v825_v27 = vpop.f32.mrf.mxu3 }
  0xc4   : > { %v826_v29 = vadd.f32 %v1606_v25, %v825_v27 }
  0xc5   : > { %v835_v26 = vpack.c.bf16 %v801_v24, %v801_v24 }
  0xc6   : > { %v836_v30 = vpack.c.bf16 %v826_v29, %v826_v29 }
  0xc7   : > { %v1098_v28 = vsel %vm1058_vm3, %v835_v26, 0 }
  0xc8   : > { %1107 = vmatpush.bf16.msra.mxu2 %v1098_v28  ;;  %v1117_v32 = vsel %vm1058_vm3, %v836_v30, 0 }
  0xc9   : > { %1126 = vmatpush.bf16.msra.mxu3 %v1117_v32 }
  0xca   : > { %v802_v31 = vpop.f32.mrf.mxu2 }
  0xcb   : > { %v827_v33 = vpop.f32.mrf.mxu3 }
 0x134   : > { %v857_v38 = vpop.f32.mrf.mxu0 }
 0x135   : > { %v1977_v39 = vsel %vm925_vm5, %v857_v38, -1e+30  ;;  %v876_v40 = vpop.f32.mrf.mxu1 }
 0x136   : > { %v934_v41 = vsel %vm555_vm2, %v1977_v39, -inf  ;;  %v1982_v42 = vsel %vm925_vm5, %v876_v40, -1e+30  ;;  %v996_v40 = vld [vmem:[#allocation4 + $0x10] sm:$0xff] }
 0x137   : > { %935 = vmax.xlane.f32.xlu1 %v934_v41  ;;  %v937_v44 = vsel %vm555_vm2, %v1982_v42, -inf }
 0x13c   : > { %v859_v43 = vpop.f32.mrf.mxu0 }
 0x13d   : > { %v878_v45 = vpop.f32.mrf.mxu1 }
 0x13f   : > { %938 = vmax.xlane.f32.xlu1 %v937_v44  ;;  %v997_v44 = vld [vmem:[#allocation4 + $0x18] sm:$0xff] }
 0x142   : > { %v895_v46 = vpop.f32.mrf.mxu2 }
 0x143   : > { %v928_v47 = vsel %vm925_vm5, %v895_v46, -1e+30  ;;  %v914_v49 = vpop.f32.mrf.mxu3  ;;  %v994_v46 = vld [vmem:[#allocation4] sm:$0xff] }
 0x144   : > { %v940_v48 = vsel %vm555_vm2, %v928_v47, -inf  ;;  %v929_v50 = vsel %vm925_vm5, %v914_v49, -1e+30 }
 0x145   : > { %941 = vmax.xlane.f32.xlu0 %v940_v48  ;;  %v943_v52 = vsel %vm555_vm2, %v929_v50, -inf }
 0x14a   : > { %v897_v51 = vpop.f32.mrf.mxu2 }
 0x14b   : > { %v916_v53 = vpop.f32.mrf.mxu3 }
 0x14c   : > { %v995_v53 = vld [vmem:[#allocation4 + $0x8] sm:$0xff] }
 0x14d   : > { %944 = vmax.xlane.f32.xlu0 %v943_v52 }
 0x1aa   : > { %v936_v57 = vpop.xlane.xlu1 %935 }
 0x1ab   : > { %v2001_v58 = vmax.f32 %v1998_v56, %v936_v57 }
 0x1ad   : > { %v950_v59 = vsub.f32 %v1998_v56, %v2001_v58  ;;  %1140 = vst.msk [vmem:[#allocation3] sm:$0xff] %vm546_vm4, %v2001_v58  ;;  %964 = vperm.xlu0 %1593, %v2001_v58  }
 0x1af   : > { %v954_v35 = vmul.f32 1.442695, %v950_v59 }
 0x1b2   : > { %v939_v61 = vpop.xlane.xlu1 %938 }
 0x1b3   : > { %v947_v62 = vmax.f32 %v2008_v60, %v939_v61 }
 0x1b5   : > { %v951_v63 = vsub.f32 %v2008_v60, %v947_v62  ;;  %1141 = vst.msk [vmem:[#allocation3 + $0x8] sm:$0xff] %vm546_vm4, %v947_v62  ;;  %969 = vperm.xlu1 %1594, %v947_v62  }
 0x1b7   : > { %v956_v37 = vmul.f32 1.442695, %v951_v63 }
 0x1b8   : > { %v942_v1 = vpop.xlane.xlu0 %941 }
 0x1b9   : > { %v948_v2 = vmax.f32 %v932_v0, %v942_v1  ;;  %v1025_v1 = vld [vmem:[#allocation5 + $0x10] sm:$0xff] }
 0x1bb   : > { %v952_v3 = vsub.f32 %v932_v0, %v948_v2  ;;  %1142 = vst.msk [vmem:[#allocation3 + $0x10] sm:$0xff] %vm546_vm4, %v948_v2  ;;  %974 = vperm.xlu2 %1592, %v948_v2  }
 0x1bd   : > { %v958_v34 = vmul.f32 1.442695, %v952_v3 }
 0x1c0   : > { %v945_v5 = vpop.xlane.xlu0 %944 }
 0x1c1   : > { %v949_v6 = vmax.f32 %v933_v4, %v945_v5 }
 0x1c3   : > { %v953_v7 = vsub.f32 %v933_v4, %v949_v6  ;;  %1143 = vst.msk [vmem:[#allocation3 + $0x18] sm:$0xff] %vm546_vm4, %v949_v6  ;;  %979 = vperm.xlu2 %1592, %v949_v6  }
 0x1c5   : > { %v960_v32 = vmul.f32 1.442695, %v953_v7 }
 0x215   : > { %v975_v8 = vpop.permute.xlu2 %974 }
 0x216   : > { %v984_v9 = vsub.f32 %v928_v47, %v975_v8 }
 0x218   : > { %v990_v10 = vmul.f32 1.442695, %v984_v9  ;;  %v1026_v9 = vld [vmem:[#allocation5 + $0x18] sm:$0xff] }
 0x21a   : > { %1608 = vpow2.f32 %v990_v10 }
 0x21d   : > { %v980_v11 = vpop.permute.xlu2 %979 }
 0x21e   : > { %v985_v12 = vsub.f32 %v929_v50, %v980_v11 }
 0x21f   : > { %v965_v15 = vpop.permute.xlu0 %964 }
 0x220   : > { %v1609_v13 = vpop.eup %1608  ;;  %v992_v14 = vmul.f32 1.442695, %v985_v12  ;;  %v982_v17 = vsub.f32 %v1977_v39, %v965_v15 }
 0x221   : > { %v1053_v16 = vpack.c.bf16 %v1609_v13, %v1609_v13  ;;  %v1008_v18 = vsel %vm555_vm2, %v1609_v13, 0.0  ;;  %v1023_v13 = vld [vmem:[#allocation5] sm:$0xff] }
 0x222   : > { %1610 = vpow2.f32 %v992_v14  ;;  %1009 = vadd.xlane.f32.xlu2 %v1008_v18  ;;  %v986_v19 = vmul.f32 1.442695, %v982_v17 }
 0x223   : > { %1500 = vmatmul.msk.bf16.vlgmr.msra.gmra.mxu2 %vm555_vm2, %v1053_v16 }
 0x224   : > { %1612 = vpow2.f32 %v986_v19 }
 0x227   : > { %v970_v21 = vpop.permute.xlu1 %969 }
 0x228   : > { %v1611_v20 = vpop.eup %1610  ;;  %v983_v23 = vsub.f32 %v1982_v42, %v970_v21 }
 0x229   : > { %v1054_v22 = vpack.c.bf16 %v1611_v20, %v1611_v20  ;;  %v1011_v24 = vsel %vm555_vm2, %v1611_v20, 0.0  ;;  %v1024_v20 = vld [vmem:[#allocation5 + $0x8] sm:$0xff] }
 0x22a   : > { %1012 = vadd.xlane.f32.xlu1 %v1011_v24  ;;  %v1613_v25 = vpop.eup %1612  ;;  %v988_v26 = vmul.f32 1.442695, %v983_v23  ;;  %v1190_v24 = vld [vmem:[%s2106_s8 + $0xc] sm:$0xf] }
 0x22b   : > { %1501 = vmatmul.msk.bf16.vlgmr.msra.gmra.mxu3 %vm555_vm2, %v1054_v22  ;;  %v1051_v27 = vpack.c.bf16 %v1613_v25, %v1613_v25  ;;  %v1002_v28 = vsel %vm555_vm2, %v1613_v25, 0.0  ;;  %v1252_v25 = vsel %vm1058_vm3, %v1190_v24, 0 }
 0x22c   : > { %1614 = vpow2.f32 %v988_v26  ;;  %1003 = vadd.xlane.f32.xlu0 %v1002_v28  ;;  %1261 = vmatpush.bf16.msrb.mxu3 %v1252_v25  ;;  %v1188_v26 = vld [vmem:[%s2106_s8 + $0x4] sm:$0xf]  ;;  %v1189_v28 = vld [vmem:[%s2106_s8 + $0x8] sm:$0xf] }
 0x22d   : > { %1498 = vmatmul.msk.bf16.vlgmr.msra.gmra.mxu0 %vm555_vm2, %v1051_v27  ;;  %1616 = vpow2.f32 %v960_v32  ;;  %v1214_v27 = vsel %vm1058_vm3, %v1188_v26, 0 }
 0x22e   : > { %1618 = vpow2.f32 %v958_v34  ;;  %1223 = vmatpush.bf16.msrb.mxu1 %v1214_v27 }
 0x22f   : > { %1620 = vpow2.f32 %v954_v35 }
 0x230   : > { %1622 = vpow2.f32 %v956_v37 }
 0x232   : > { %v1615_v29 = vpop.eup %1614 }
 0x233   : > { %v1052_v30 = vpack.c.bf16 %v1615_v29, %v1615_v29  ;;  %v1005_v31 = vsel %vm555_vm2, %v1615_v29, 0.0  ;;  %v1617_v33 = vpop.eup %1616  ;;  %v1233_v29 = vsel %vm1058_vm3, %v1189_v28, 0 }
 0x234   : > { %1006 = vadd.xlane.f32.xlu2 %v1005_v31  ;;  %v1619_v36 = vpop.eup %1618  ;;  %v1001_v45 = vmul.f32 %v1617_v33, %v997_v44  ;;  %1242 = vmatpush.bf16.msrb.mxu2 %v1233_v29 }
 0x235   : > { %1499 = vmatmul.msk.bf16.vlgmr.msra.gmra.mxu1 %vm555_vm2, %v1052_v30  ;;  %v1621_v38 = vpop.eup %1620  ;;  %v1000_v41 = vmul.f32 %v1619_v36, %v996_v40  ;;  %v1187_v30 = vld [vmem:[%s2106_s8] sm:$0xf] }
 0x236   : > { %v1623_v39 = vpop.eup %1622  ;;  %v998_v49 = vmul.f32 %v1621_v38, %v994_v46  ;;  %v1195_v31 = vsel %vm1058_vm3, %v1187_v30, 0 }
 0x237   : > { %v999_v56 = vmul.f32 %v1623_v39, %v995_v53  ;;  %1204 = vmatpush.bf16.msrb.mxu0 %v1195_v31 }
 0x243   : > { %1044 = vperm.xlu1 %1594, %v1617_v33  }
 0x24c   : > { %1039 = vperm.xlu2 %1592, %v1619_v36  }
 0x254   : > { %1029 = vperm.xlu2 %1592, %v1621_v38  }
 0x25c   : > { %1034 = vperm.xlu2 %1592, %v1623_v39  }
 0x295   : > { %v1010_v42 = vpop.xlane.xlu2 %1009 }
 0x296   : > { %v1016_v43 = vadd.f32 %v1010_v42, %v1000_v41 }
 0x298   : > { %1021 = vst.msk [vmem:[#allocation4 + $0x10] sm:$0xff] %vm546_vm4, %v1016_v43 }
 0x29d   : > { %v1013_v47 = vpop.xlane.xlu1 %1012 }
 0x29e   : > { %v1017_v48 = vadd.f32 %v1013_v47, %v1001_v45 }
 0x29f   : > { %v1153_v50 = vld [vmem:[#allocation4 + $0x10] sm:$0xff]  ;;  %v1004_v51 = vpop.xlane.xlu0 %1003 }
 0x2a0   : > { %1022 = vst.msk [vmem:[#allocation4 + $0x18] sm:$0xff] %vm546_vm4, %v1017_v48  ;;  %1624 = vrcp.f32 %v1153_v50  ;;  %v1014_v52 = vadd.f32 %v1004_v51, %v998_v49 }
 0x2a2   : > { %1019 = vst.msk [vmem:[#allocation4] sm:$0xff] %vm546_vm4, %v1014_v52 }
 0x2a6   : > { %v1625_v54 = vpop.eup %1624  ;;  %v1109_v55 = vpop.f32.mrf.mxu2 }
 0x2a7   : > { %1171 = vperm.xlu0 %1593, %v1625_v54   ;;  %v1154_v57 = vld [vmem:[#allocation4 + $0x18] sm:$0xff]  ;;  %v1007_v58 = vpop.xlane.xlu2 %1006 }
 0x2a8   : > { %1626 = vrcp.f32 %v1154_v57  ;;  %v1015_v59 = vadd.f32 %v1007_v58, %v999_v56 }
 0x2a9   : > { %v1151_v60 = vld [vmem:[#allocation4] sm:$0xff] }
 0x2aa   : > { %1020 = vst.msk [vmem:[#allocation4 + $0x8] sm:$0xff] %vm546_vm4, %v1015_v59  ;;  %v1071_v61 = vpop.f32.mrf.mxu0  ;;  %1628 = vrcp.f32 %v1151_v60  ;;  %v1607_v60 = vld [vmem:[%s2107_s9] ss:$0 sm:$0xff] }
 0x2ae   : > { %v1627_v62 = vpop.eup %1626  ;;  %v1111_v63 = vpop.f32.mrf.mxu2 }
 0x2af   : > { %v1128_v0 = vpop.f32.mrf.mxu3  ;;  %1176 = vperm.xlu2 %1592, %v1627_v62   ;;  %v1040_v2 = vpop.permute.xlu2 %1039 }
 0x2b0   : > { %v1629_v3 = vpop.eup %1628  ;;  %v1049_v4 = vmul.f32 %v1040_v2, %v1025_v1 }
 0x2b1   : > { %1161 = vperm.xlu1 %1594, %v1629_v3   ;;  %v1152_v5 = vld [vmem:[#allocation4 + $0x8] sm:$0xff] }
 0x2b2   : > { %v1134_v6 = vadd.f32 %v1109_v55, %v1049_v4  ;;  %v1073_v7 = vpop.f32.mrf.mxu0  ;;  %v1090_v8 = vpop.f32.mrf.mxu1  ;;  %1630 = vrcp.f32 %v1152_v5 }
 0x2b4   : > { %1138 = vst.msk [vmem:[#allocation5 + $0x10] sm:$0xff] %vm555_vm2, %v1134_v6 }
 0x2b5   : > { %v1045_v10 = vpop.permute.xlu1 %1044 }
 0x2b6   : > { %v1050_v11 = vmul.f32 %v1045_v10, %v1026_v9 }
 0x2b7   : > { %v1130_v12 = vpop.f32.mrf.mxu3  ;;  %v1030_v15 = vpop.permute.xlu2 %1029 }
 0x2b8   : > { %v1135_v14 = vadd.f32 %v1128_v0, %v1050_v11  ;;  %v1631_v16 = vpop.eup %1630  ;;  %v1047_v17 = vmul.f32 %v1030_v15, %v1023_v13 }
 0x2b9   : > { %1166 = vperm.xlu2 %1592, %v1631_v16  }
 0x2ba   : > { %1139 = vst.msk [vmem:[#allocation5 + $0x18] sm:$0xff] %vm555_vm2, %v1135_v14  ;;  %v1132_v18 = vadd.f32 %v1071_v61, %v1047_v17  ;;  %v1092_v19 = vpop.f32.mrf.mxu1 }
 0x2bb   : > { %v1149_v41 = vld [vmem:[#allocation5 + $0x10] sm:$0xff] }
 0x2bc   : > { %1136 = vst.msk [vmem:[#allocation5] sm:$0xff] %vm555_vm2, %v1132_v18 }
 0x2bf   : > { %v1035_v21 = vpop.permute.xlu2 %1034 }
 0x2c0   : > { %v1048_v22 = vmul.f32 %v1035_v21, %v1024_v20 }
 0x2c1   : > { %v1150_v32 = vld [vmem:[#allocation5 + $0x18] sm:$0xff] }
 0x2c2   : > { %v1133_v23 = vadd.f32 %v1090_v8, %v1048_v22 }
 0x2c3   : > { %v1147_v45 = vld [vmem:[#allocation5] sm:$0xff] }
 0x2c4   : > { %1137 = vst.msk [vmem:[#allocation5 + $0x8] sm:$0xff] %vm555_vm2, %v1133_v23 }
 0x2cb   : > { %v1148_v36 = vld [vmem:[#allocation5 + $0x8] sm:$0xff] }
 0x309   : > { %v1177_v33 = vpop.permute.xlu2 %1176 }
 0x30a   : > { %v1182_v34 = vmul.f32 %v1177_v33, %v1150_v32 }
 0x30c   : > { %v1186_v35 = vpack.c.bf16 %v1182_v34, %v1182_v34 }
 0x30e   : > { %1505 = vmatmul.msk.bf16.vlgmr.msrb.gmra.mxu3 %vm555_vm2, %v1186_v35 }
 0x313   : > { %v1167_v37 = vpop.permute.xlu2 %1166 }
 0x314   : > { %v1180_v38 = vmul.f32 %v1167_v37, %v1148_v36 }
 0x316   : > { %v1184_v39 = vpack.c.bf16 %v1180_v38, %v1180_v38 }
 0x318   : > { %1503 = vmatmul.msk.bf16.vlgmr.msrb.gmra.mxu1 %vm555_vm2, %v1184_v39 }
 0x319   : > { %v1172_v40 = vpop.permute.xlu0 %1171 }
 0x31a   : > { %v1181_v42 = vmul.f32 %v1172_v40, %v1149_v41 }
 0x31c   : > { %v1185_v43 = vpack.c.bf16 %v1181_v42, %v1181_v42 }
 0x31e   : > { %1504 = vmatmul.msk.bf16.vlgmr.msrb.gmra.mxu2 %vm555_vm2, %v1185_v43 }
 0x323   : > { %v1162_v44 = vpop.permute.xlu1 %1161 }
 0x324   : > { %v1179_v46 = vmul.f32 %v1162_v44, %v1147_v45 }
 0x326   : > { %v1183_v47 = vpack.c.bf16 %v1179_v46, %v1179_v46 }
 0x328   : > { %1502 = vmatmul.msk.bf16.vlgmr.msrb.gmra.mxu0 %vm555_vm2, %v1183_v47 }
 0x391   : > { %v1263_v48 = vpop.f32.mrf.mxu3 }
 0x392   : > { %v1272_v61 = vsel %vm445_vm0, %v1263_v48, 0.0 }
 0x395   : > { %v1225_v49 = vpop.f32.mrf.mxu1 }
 0x396   : > { %v1268_v54 = vsel %vm445_vm0, %v1225_v49, 0.0 }
 0x399   : > { %v1265_v50 = vpop.f32.mrf.mxu3 }
 0x39d   : > { %v1227_v51 = vpop.f32.mrf.mxu1 }
 0x3a1   : > { %v1244_v52 = vpop.f32.mrf.mxu2 }
 0x3a2   : > { %v1270_v57 = vsel %vm445_vm0, %v1244_v52, 0.0 }
 0x3a5   : > { %v1206_v53 = vpop.f32.mrf.mxu0 }
 0x3a6   : > { %v1267_v55 = vsel %vm445_vm0, %v1206_v53, 0.0 }
 0x3a7   : > { %v1269_v56 = vadd.f32 %v1268_v54, %v1267_v55 }
 0x3a9   : > { %v1246_v58 = vpop.f32.mrf.mxu2  ;;  %v1271_v59 = vadd.f32 %v1270_v57, %v1269_v56 }
 0x3ab   : > { %v1273_v62 = vadd.f32 %v1272_v61, %v1271_v59 }
 0x3ad   : > { %v1278_v63 = vadd.f32 %v1607_v60, %v1273_v62  ;;  %v1208_v0 = vpop.f32.mrf.mxu0 }
 0x3af   : > { %1279 = vst.msk [vmem:[%s383_s16] sm:$0xff] %vm445_vm0, %v1278_v63 }
 0x3b0   : > { %1659 = shalt.err (!%p1656_p5)
}
 0x3b1   : > { %1534 = dma.vmem_to_hbm [thread:$0]  (%p1810_p4), %s1294_s19, 128, %s1296_s24, %s1281_s17  }
 0x3b2 PF: > { %p1540_p6 = scmp.ge.s32.totalorder %s1710_s18, 2  ;;  %s1307_s28 = sand.u32 1, %s1690_s13  }
 0x3b3   : > { %s1308_s20 = scalar_lea.sflag [#allocation7], %s1307_s28 }
 0x3b4   : > { %p1537_p7 = pnand %p1540_p6, %p1817_p8 }
 0x3b6   : > { %p1538_p9 = pneg %p1537_p7 }
 0x3b8   : > { %1685 = dma.done.wait (%p1538_p9), %s1308_s20, 128  }
 0x3b9   : > { %1687 = vsyncadd (%p1538_p9), %s1308_s20, 4294967168  ;;  %s23_s18 = sadd.s32 1, %s1710_s18   ;;  %s2116_s22 = sld [smem:[#allocation11_spill]] }
 0x3ba   : > { %p20_p10 = scmp.ge.s32.totalorder %s23_s18, 4   ;;  %s2117_s16 = sld [smem:[#allocation9_spill]] }
 0x3bb   : > { %s2118_s17 = sld [smem:[#allocation10_spill]]  ;;  %s2119_s13 = smov %s1694_s14 }
 0x3bc   : > { %s2120_s14 = smov %s1698_s15  ;;  %22 = sbr.rel (!%p20_p10) target bundleno = 4 (0x4), region = 106 }
 0x3bf   : > { %s2121_s15 = smov %s2116_s22 }
 0x3c1   :  { %1314 = vsyncpa [#allocation7], 1 }
 0x3c2   :  { %1316 = vsyncpa [#allocation7 + $0x1], 1 }

</bundles_post_ra>
